<compile_context>
chip_gen: v7x
topology: tpu7x:2x2x1
jax: 0.10.0
libtpu: 0.0.40
codegen_flags: <defaults>
</compile_context>

<pallas_src>
import jax
import jax.numpy as jnp
from jax import lax
from jax.experimental import pallas as pl
from jax.experimental.pallas import tpu as pltpu


def seghead_kernel(patch_ref, w3_ref, bias_ref, w1_ref, o_ref):
    # patch_ref : (1, 9*Cin, T_HW)  bf16  im2col'd input tile (spatial on lanes)
    # w3_ref    : (Cout, 9*Cin)     bf16  BN-folded, tap-packed 3x3 weights
    # bias_ref  : (Cout, 1)         f32   folded BN bias (beta - mean*scale)
    # w1_ref    : (NCls, Cout)      bf16  1x1 conv weights
    # o_ref     : (1, NCls, T_HW)   f32   lane-dense output tile
    patches = patch_ref[0]                                       # (9*Cin, T_HW)

    # 3x3 conv (+ folded BN scale) as a single MXU matmul, K = 9*Cin.
    acc = jnp.dot(w3_ref[...], patches,
                  preferred_element_type=jnp.float32)            # (Cout, T_HW) f32

    # Folded BN bias + ReLU, kept in f32 on the VPU.
    y = jnp.maximum(acc + bias_ref[...], 0.0)

    # 1x1 conv (no bias): (NCls, Cout) @ (Cout, T_HW) -> lane-dense result.
    out = jnp.dot(w1_ref[...], y.astype(jnp.bfloat16),
                  preferred_element_type=jnp.float32)            # (NCls, T_HW)
    o_ref[0] = out.astype(o_ref.dtype)


def _pick_hw_tile(hw, max_tile=2048):
    """Largest multiple of 128 that divides hw and is <= max_tile; else hw."""
    for t in range(min(max_tile, hw), 127, -128):
        if hw % t == 0 and t % 128 == 0:
            return t
    return hw


def seghead_forward(x_nchw, w3_torch, w1_torch, bn_gamma, bn_beta,
                    bn_mean, bn_var, bn_eps=1e-5):
    """x_nchw: (N, Cin, H, W) float32. Returns (N, NCls, H, W) float32."""
    N, Cin, H, W = x_nchw.shape
    Cout = w3_torch.shape[0]
    NCls = w1_torch.shape[0]
    HW = H * W
    K9 = 9 * Cin

    # ---- BN fold into the 3x3 conv weights (exact in eval mode), in f32 ----
    scale = bn_gamma / jnp.sqrt(bn_var + bn_eps)                     # (Cout,)
    w3_folded = w3_torch * scale[:, None, None, None]                # (Cout,Cin,3,3)
    bias = (bn_beta - bn_mean * scale).reshape(Cout, 1)              # (Cout,1) f32

    # ---- weight packing: K index = (dy*3 + dx)*Cin + c, cast AFTER folding ----
    w3_packed = jnp.transpose(w3_folded, (0, 2, 3, 1)).reshape(Cout, K9)
    w3_packed = w3_packed.astype(jnp.bfloat16)                       # (Cout, 9*Cin)
    w1_packed = w1_torch[:, :, 0, 0].astype(jnp.bfloat16)            # (NCls, Cout)

    # ---- transposed im2col: (N, 9*Cin, H*W); spatial -> lane axis, halo baked in ----
    xp = jnp.pad(x_nchw, ((0, 0), (0, 0), (1, 1), (1, 1)))           # padding=1
    taps = [xp[:, :, dy:dy + H, dx:dx + W].reshape(N, Cin, HW)
            for dy in range(3) for dx in range(3)]
    patches = jnp.concatenate(taps, axis=1).astype(jnp.bfloat16)     # (N, 9*Cin, HW)

    t_hw = _pick_hw_tile(HW)
    grid = (N, HW // t_hw)

    out = pl.pallas_call(
        seghead_kernel,
        out_shape=jax.ShapeDtypeStruct((N, NCls, HW), jnp.float32),
        grid_spec=pltpu.PrefetchScalarGridSpec(
            num_scalar_prefetch=0,
            grid=grid,
            in_specs=[
                pl.BlockSpec((1, K9, t_hw), lambda n, s: (n, 0, s)),
                pl.BlockSpec((Cout, K9), lambda n, s: (0, 0)),
                pl.BlockSpec((Cout, 1), lambda n, s: (0, 0)),
                pl.BlockSpec((NCls, Cout), lambda n, s: (0, 0)),
            ],
            out_specs=pl.BlockSpec((1, NCls, t_hw), lambda n, s: (n, 0, s)),
        ),
        compiler_params=pltpu.CompilerParams(
            dimension_semantics=("parallel", "parallel")),
    )(patches, w3_packed, bias, w1_packed)

    # (N, NCls, H*W) -> (N, NCls, H, W): contiguous reshape, no transpose.
    return out.reshape(N, NCls, H, W)


def seghead_reference(x_nchw, w3_torch, w1_torch, bn_gamma, bn_beta,
                      bn_mean, bn_var, bn_eps=1e-5):
    """Pure-JAX f32 reference (NCHW, mirrors PyTorch semantics in eval mode)."""
    y = lax.conv_general_dilated(
        x_nchw, w3_torch, window_strides=(1, 1), padding=((1, 1), (1, 1)),
        dimension_numbers=("NCHW", "OIHW", "NCHW"))
    scale = (bn_gamma / jnp.sqrt(bn_var + bn_eps)).reshape(1, -1, 1, 1)
    bias = (bn_beta - bn_mean * bn_gamma / jnp.sqrt(bn_var + bn_eps)).reshape(1, -1, 1, 1)
    y = jnp.maximum(y * scale + bias, 0.0)
    return lax.conv_general_dilated(
        y, w1_torch, window_strides=(1, 1), padding=((0, 0), (0, 0)),
        dimension_numbers=("NCHW", "OIHW", "NCHW"))


if __name__ == "__main__":
    # Small shapes consistent with SegHead(in_channels=4, out_channels=32, n_classes=8)
    N, Cin, H, W = 2, 4, 16, 16
    Cout, NCls = 32, 8

    key = jax.random.PRNGKey(0)
    k_x, k_w3, k_w1 = jax.random.split(key, 3)

    x = jax.random.normal(k_x, (N, Cin, H, W), jnp.float32)

    # kaiming_normal_(a=1): gain = sqrt(2/(1+a^2)) = 1, std = 1/sqrt(fan_in)
    std3 = 1.0 / (Cin * 3 * 3) ** 0.5
    w3 = jax.random.normal(k_w3, (Cout, Cin, 3, 3), jnp.float32) * std3
    std1 = 1.0 / (Cout * 1 * 1) ** 0.5
    w1 = jax.random.normal(k_w1, (NCls, Cout, 1, 1), jnp.float32) * std1

    # BatchNorm2d default init (eval mode): gamma=1, beta=0, mean=0, var=1
    bn_gamma = jnp.ones((Cout,), jnp.float32)
    bn_beta = jnp.zeros((Cout,), jnp.float32)
    bn_mean = jnp.zeros((Cout,), jnp.float32)
    bn_var = jnp.ones((Cout,), jnp.float32)

    out = seghead_forward(x, w3, w1, bn_gamma, bn_beta, bn_mean, bn_var)
    out = jax.block_until_ready(out)

    ref = seghead_reference(x, w3, w1, bn_gamma, bn_beta, bn_mean, bn_var)
    assert out.shape == (N, NCls, H, W), out.shape
    # bf16 MXU inputs (f32 accumulation) -> relaxed tolerance vs. the f32 reference.
    assert jnp.allclose(out, ref, atol=5e-2, rtol=5e-2), float(
        jnp.max(jnp.abs(out - ref)))

    print("KERNEL_OK")
</pallas_src>

<mosaic_0001>
module attributes {stable_mosaic.version = 11 : i64} {
  func.func @seghead_kernel(%arg0: i32, %arg1: i32, %arg2: memref<1x36x256xbf16, #tpu.memory_space<vmem>>, %arg3: memref<32x36xbf16, #tpu.memory_space<vmem>>, %arg4: memref<32x1xf32, #tpu.memory_space<vmem>>, %arg5: memref<8x32xbf16, #tpu.memory_space<vmem>>, %arg6: memref<1x8x256xf32, #tpu.memory_space<vmem>>) attributes {dimension_semantics = [#tpu.dimension_semantics<parallel>, #tpu.dimension_semantics<parallel>], iteration_bounds = array<i64: 2, 1>, scalar_prefetch = 0 : i64, scratch_operands = 0 : i64, tpu.core_type = #tpu.core_type<tc>, window_params = [{transform_indices = @transform_0, window_bounds = array<i64: 1, 36, 256>}, {pipeline_mode = #tpu.pipeline_mode<synchronous>, transform_indices = @transform_1, window_bounds = array<i64: 32, 36>}, {pipeline_mode = #tpu.pipeline_mode<synchronous>, transform_indices = @transform_2, window_bounds = array<i64: 32, 1>}, {pipeline_mode = #tpu.pipeline_mode<synchronous>, transform_indices = @transform_3, window_bounds = array<i64: 8, 32>}, {transform_indices = @transform_4, window_bounds = array<i64: 1, 8, 256>}]} {
    %c0 = arith.constant 0 : index
    %c0_0 = arith.constant 0 : index
    %c0_1 = arith.constant 0 : index
    %0 = vector.load %arg2[%c0, %c0_0, %c0_1] : memref<1x36x256xbf16, #tpu.memory_space<vmem>>, vector<1x36x256xbf16>
    %1 = vector.shape_cast %0 : vector<1x36x256xbf16> to vector<36x256xbf16>
    %c0_2 = arith.constant 0 : index
    %c0_3 = arith.constant 0 : index
    %2 = vector.load %arg3[%c0_2, %c0_3] : memref<32x36xbf16, #tpu.memory_space<vmem>>, vector<32x36xbf16>
    %cst = arith.constant dense<0.000000e+00> : vector<32x256xf32>
    %3 = tpu.matmul %2, %1, %cst {dimension_numbers = #tpu.dot_dimension_numbers<[1], [0], [0], [1], [0, 0, 1, 1], [], []>} : vector<32x36xbf16>, vector<36x256xbf16>, vector<32x256xf32> -> vector<32x256xf32>
    %c0_4 = arith.constant 0 : index
    %c0_5 = arith.constant 0 : index
    %4 = vector.load %arg4[%c0_4, %c0_5] : memref<32x1xf32, #tpu.memory_space<vmem>>, vector<32x1xf32>
    %5 = vector.broadcast %4 : vector<32x1xf32> to vector<32x256xf32>
    %6 = arith.addf %3, %5 : vector<32x256xf32>
    %cst_6 = arith.constant 0.000000e+00 : f32
    %7 = vector.broadcast %cst_6 : f32 to vector<32x256xf32>
    %8 = arith.maximumf %6, %7 : vector<32x256xf32>
    %c0_7 = arith.constant 0 : index
    %c0_8 = arith.constant 0 : index
    %9 = vector.load %arg5[%c0_7, %c0_8] : memref<8x32xbf16, #tpu.memory_space<vmem>>, vector<8x32xbf16>
    %10 = arith.truncf %8 : vector<32x256xf32> to vector<32x256xbf16>
    %cst_9 = arith.constant dense<0.000000e+00> : vector<8x256xf32>
    %11 = tpu.matmul %9, %10, %cst_9 {dimension_numbers = #tpu.dot_dimension_numbers<[1], [0], [0], [1], [0, 0, 1, 1], [], []>} : vector<8x32xbf16>, vector<32x256xbf16>, vector<8x256xf32> -> vector<8x256xf32>
    %c0_10 = arith.constant 0 : index
    %c0_11 = arith.constant 0 : index
    %c0_12 = arith.constant 0 : index
    %12 = vector.load %arg6[%c0_10, %c0_11, %c0_12] : memref<1x8x256xf32, #tpu.memory_space<vmem>>, vector<1x8x256xf32>
    %13 = vector.shape_cast %12 : vector<1x8x256xf32> to vector<8x256xf32>
    %14 = vector.shape_cast %11 : vector<8x256xf32> to vector<1x8x256xf32>
    tpu.vector_store %arg6[%c0_10, %c0_11, %c0_12], %14 {strides = array<i32>} : memref<1x8x256xf32, #tpu.memory_space<vmem>>, vector<1x8x256xf32>,
    return
  }
  func.func @transform_0(%arg0: i32, %arg1: i32) -> (i32, i32, i32) {
    %c0_i32 = arith.constant 0 : i32
    %c0_i32_0 = arith.constant 0 : i32
    return %arg0, %c0_i32, %arg1 : i32, i32, i32
  }
  func.func @transform_1(%arg0: i32, %arg1: i32) -> (i32, i32) {
    %c0_i32 = arith.constant 0 : i32
    %c0_i32_0 = arith.constant 0 : i32
    %c0_i32_1 = arith.constant 0 : i32
    return %c0_i32, %c0_i32_0 : i32, i32
  }
  func.func @transform_2(%arg0: i32, %arg1: i32) -> (i32, i32) {
    %c0_i32 = arith.constant 0 : i32
    %c0_i32_0 = arith.constant 0 : i32
    %c0_i32_1 = arith.constant 0 : i32
    return %c0_i32, %c0_i32_0 : i32, i32
  }
  func.func @transform_3(%arg0: i32, %arg1: i32) -> (i32, i32) {
    %c0_i32 = arith.constant 0 : i32
    %c0_i32_0 = arith.constant 0 : i32
    %c0_i32_1 = arith.constant 0 : i32
    return %c0_i32, %c0_i32_0 : i32, i32
  }
  func.func @transform_4(%arg0: i32, %arg1: i32) -> (i32, i32, i32) {
    %c0_i32 = arith.constant 0 : i32
    %c0_i32_0 = arith.constant 0 : i32
    return %arg0, %c0_i32, %arg1 : i32, i32, i32
  }
}

</mosaic_0001>

<bundles_post_ra>
// kernel: tpu_custom_call.1
= control target key start
LH: loop header
LB: loop body
LE: loop exit
PB: predicated region body
PF: predicated region fallthrough
CT: control target
= control target key end

     0   :  { %9 = vsyncpa [#allocation3], 0  ;;  %s850_s0 = inlined_call_operand.vmem [shape: bf16[2,36,256], index: 0, kind: input, shape index: {}]   ;;  %s851_s1 = inlined_call_operand.vmem [shape: bf16[32,36], index: 1, kind: input, shape index: {}]   ;;  %s852_s2 = inlined_call_operand.vmem [shape: f32[32,1], index: 2, kind: input, shape index: {}]   ;;  %s853_s3 = inlined_call_operand.vmem [shape: bf16[8,32], index: 3, kind: input, shape index: {}]   ;;  %s854_s4 = inlined_call_operand.hbm [shape: f32[2,8,256], index: 4, kind: output, shape index: {}]  }
   0x1   :  { %11 = vsyncpa [#allocation3 + $0x1], 0  ;;  %s717_s15 = smov 0   ;;  %s719_s16 = smov 0  }
   0x2   :  { %s721_s17 = smov 0   ;;  %s723_s18 = smov 0  }
   0x3   :  { %s725_s19 = smov 0   ;;  %s727_s20 = smov 0  }
   0x4 LB: > { %s516_s21 = sadd.s32 4294967295, %s688_s20   ;;  %s517_s22 = sadd.s32 4294967294, %s688_s20   ;;  %s688_s20 = sphi %s727_s20, %s17_s20   ;;  %s684_s19 = sphi %s725_s19, %s861_s19   ;;  %s680_s18 = sphi %s723_s18, %s860_s18   ;;  %s676_s17 = sphi %s721_s17, %s859_s17   ;;  %s672_s16 = sphi %s719_s16, %s858_s16   ;;  %s668_s15 = sphi %s717_s15, %s857_s15  }
   0x5   : > { %s29_s23 = sadd.s32 1, %s684_s19  ;;  %s129_s24 = sadd.s32 1, %s676_s17 }
   0x6   : > { %p31_p0 = scmp.ge.s32.totalorder %s29_s23, 2  ;;  %p139_p1 = scmp.ne.s32.totalorder %s676_s17, %s672_s16 }
   0x7   : > { %p140_p2 = scmp.eq.s32.totalorder %s516_s21, 1  ;;  %p145_p3 = scmp.ne.s32.totalorder %s672_s16, %s668_s15 }
   0x8   : > { %s863_s23 = smov (%p31_p0, %s29_s23), 0  ;;  %p146_p5 = scmp.eq.s32.totalorder %s517_s22, 1 }
   0x9   : > { %p757_p4 = por %p140_p2, %p139_p1  ;;  %s124_s26 = ssub.s32 %s684_s19, %s863_s23 }
   0xa   : > { %p520_p6 = scmp.ge.s32.totalorder %s688_s20, 1  ;;  %p127_p7 = scmp.eq.s32.totalorder %s124_s26, 0 }
   0xb   : > { %p764_p8 = por %p146_p5, %p145_p3  ;;  %p186_p9 = scmp.lt.s32.totalorder %s688_s20, 3 }
   0xc   : > { %s770_s28 = scalar_select %p127_p7, %s676_s17, %s129_s24  }
   0xd   : > { %p187_p10 = pnand %p520_p6, %p186_p9 }
   0xe   : > { %p217_p11 = scmp.lt.s32.totalorder (!%p187_p10), %s680_s18, 1  ;;  %v690_v0 = vmov (!%p187_p10), 0   ;;  %v237_v1 = vld [vmem:[%s852_s2] sm:$0xff] (!%p187_p10)  ;;  %v239_v2 = vld [vmem:[%s852_s2 + $0x10] sm:$0xff] (!%p187_p10)  ;;  %v238_v3 = vld [vmem:[%s852_s2 + $0x8] sm:$0xff] (!%p187_p10)  ;;  %vm303_vm0 = vcmask (!%p187_p10), 1041408  }
   0xf   : > { %190 = sbr.rel (%p187_p10) target bundleno = 501 (0x1f5), region = 36  ;;  %342 = vmatprep.mubr.bf16.mxu0 (!%p187_p10), %v690_v0  ;;  %598 = vset.pattern.permute.xlu0 (!%p187_p10), %v690_v0  ;;  %v240_v4 = vld [vmem:[%s852_s2 + $0x18] sm:$0xff] (!%p187_p10)  ;;  %v608_v13 = vld [vmem:[%s851_s1] sm:$0xff] (!%p187_p10)   ;;  %vm296_vm1 = vcmask (!%p187_p10), 293888   ;;  %v609_v14 = vld [vmem:[%s851_s1 + $0x8] sm:$0xff] (!%p187_p10)   ;;  %vm376_vm2 = vcmask (!%p187_p10), 261120  }
  0x10   : > { %599 = vset.pattern.permute.xlu1 (!%p187_p10), %v690_v0  ;;  %412 = vmatprep.mubr.bf16.mxu1 (!%p187_p10), %v690_v0  ;;  %v371_v47 = vld [vmem:[%s853_s3] sm:$0xf] (!%p187_p10)  ;;  %s213_s6 = sand.u32 (!%p187_p10), 1, %s672_s16   ;;  %s540_s10 = sshll.u32 (!%p187_p10), %s680_s18, 8 }
  0x11   : > { %243 = vperm.xlu0 (!%p187_p10), %598, %v237_v1   ;;  %253 = vperm.xlu1 (!%p187_p10), %599, %v239_v2   ;;  %s521_s7 = sshll.u32 (!%p187_p10), %s213_s6, 4  ;;  %s805_s13 = scalar_lea.hbm (!%p187_p10), %s854_s4, %s540_s10 }
  0x12   : > { %s424_s14 = scalar_lea.sflag (!%p187_p10), [#allocation3], %s213_s6 }
  0x15   : > { %248 = vperm.xlu0 (!%p187_p10), %598, %v238_v3   ;;  %258 = vperm.xlu1 (!%p187_p10), %599, %v240_v4  }
  0x16   : > { %s218_s29 = scalar_select %p217_p11, %s680_s18, 1 }
  0x17   : > { %s691_s18 = smov [#allocation2]  }
  0x18   : > { %s541_s8 = smul.u32 40, %s218_s29  ;;  %s614_s22 = sshll.u32 %s691_s18, 4  ;;  %s615_s22 = int_to_ptr.vmem [resolvable:$false] %s614_s22 }
  0x19   : > { %s616_s24 = scalar_lea.vmem %s615_s22, 512 }
  0x1a   : > { %s224_s21 = scalar_lea.vmem %s850_s0, %s541_s8  ;;  %s215_s8 = scalar_lea.vmem [#allocation2], %s521_s7 }
  0x1b   : > { %v600_v5 = vld [vmem:[%s224_s21 + $0x4] ss:$8 sps:$4 sm:$0xff]   ;;  %v602_v6 = vld [vmem:[%s224_s21] ss:$8 sps:$4 sm:$0xff]   ;;  %v603_v7 = vld [vmem:[%s224_s21 + $0x14] ss:$8 sps:$4 sm:$0xff]  }
  0x1c   : > { %310 = vmatprep.subr.bf16.mxu0 %v600_v5  ;;  %v232_v8 = vld [vmem:[%s224_s21 + $0x20] sm:$0x33]  ;;  %v605_v9 = vld [vmem:[%s224_s21 + $0x10] ss:$8 sps:$4 sm:$0xff]   ;;  %s440_s9 = sshll.u32 %s215_s8, 4  ;;  %s800_s9 = int_to_ptr.vmem [resolvable:$true] %s440_s9 }
  0x1d   : > { %311 = vmatpush1.bf16.msra.mxu0 %v602_v6  ;;  %v530_v10 = vcombine.high %v232_v8, %v232_v8  ;;  %v529_v11 = vcombine.low %v232_v8, %v232_v8  ;;  %s610_s21 = scalar_lea.vmem %s800_s9, 256  ;;  %p617_p1 = scmp.lt.s32.totalorder %s800_s9, %s615_s22 }
  0x1e   : > { %312 = vmatprep.subr.bf16.mxu0 %v603_v7  ;;  %p611_p12 = scmp.ne.s32.totalorder %s800_s9, %s610_s21  ;;  %p618_p2 = scmp.lt.s32.totalorder %s616_s24, %s610_s21 }
  0x1f   : > { %v305_v12 = vsel %vm303_vm0, %v529_v11, 0 }
  0x20   : > { %p612_p13 = pnand %p611_p12, %p757_p4  ;;  %p619_p3 = por %p618_p2, %p617_p1 }
  0x21   : > { %313 = vmatpush1.bf16.msra.mxu0 %v605_v9 }
  0x22   : > { %531 = vmatprep.subr.msk.bf16.mxu0 %vm303_vm0, %v530_v10  ;;  %p613_p0 = pneg %p612_p13 }
  0x24   : > { %p620_p5 = pnand %p619_p3, %p613_p0 }
  0x25   : > { %315 = vmatpush1.bf16.msra.mxu0 %v305_v12 }
  0x28   : > { %532 = vmatmul.mubr.msk.bf16.vlgmr.msra.gmra.mrb[0].mxu0 %vm296_vm1, %v608_v13 }
  0x29   : > { %352 = vmatprep.mubr.bf16.mxu0 %v690_v0 }
  0x30   : > { %533 = vmatmul.mubr.msk.bf16.gmra.mrb[4].mxu0 %vm296_vm1, %v609_v14 }
  0x90   : > { %v244_v15 = vpop.permute.xlu0 %243  ;;  %v254_v24 = vpop.permute.xlu1 %253 }
  0x94   : > { %v249_v17 = vpop.permute.xlu0 %248  ;;  %v259_v35 = vpop.permute.xlu1 %258 }
  0xfb   : > { %v344_v16 = vpop.f32.mrb[0].mxu0 }
  0xfc   : > { %v345_v18 = vadd.f32 %v344_v16, %v244_v15  ;;  %v346_v19 = vpop.f32.mrb[1].mxu0 }
  0xfd   : > { %v347_v20 = vadd.f32 %v346_v19, %v244_v15  ;;  %v348_v21 = vpop.f32.mrb[2].mxu0 }
  0xfe   : > { %v349_v22 = vadd.f32 %v348_v21, %v249_v17  ;;  %v350_v23 = vpop.f32.mrb[3].mxu0  ;;  %v363_v26 = vmax.f32 %v345_v18, 0.0 }
  0xff   : > { %v351_v25 = vadd.f32 %v350_v23, %v249_v17  ;;  %v364_v28 = vmax.f32 %v347_v20, 0.0 }
 0x100   : > { %v365_v27 = vmax.f32 %v349_v22, 0.0 }
 0x101   : > { %v366_v29 = vmax.f32 %v351_v25, 0.0 }
 0x102   : > { %v372_v30 = vpack.c.bf16 %v365_v27, %v363_v26 }
 0x103   : > { %v354_v31 = vpop.f32.mrb[4].mxu0  ;;  %v373_v32 = vpack.c.bf16 %v366_v29, %v364_v28 }
 0x104   : > { %v355_v33 = vadd.f32 %v354_v31, %v254_v24  ;;  %v356_v34 = vpop.f32.mrb[5].mxu0 }
 0x105   : > { %v357_v36 = vadd.f32 %v356_v34, %v254_v24  ;;  %v358_v37 = vpop.f32.mrb[6].mxu0  ;;  %380 = vmatprep.subr.bf16.mxu1 %v373_v32 }
 0x106   : > { %v359_v38 = vadd.f32 %v358_v37, %v259_v35  ;;  %v360_v39 = vpop.f32.mrb[7].mxu0  ;;  %381 = vmatpush1.bf16.msra.mxu1 %v372_v30  ;;  %v367_v41 = vmax.f32 %v355_v33, 0.0 }
 0x107   : > { %v361_v40 = vadd.f32 %v360_v39, %v259_v35  ;;  %v368_v43 = vmax.f32 %v357_v36, 0.0 }
 0x108   : > { %v369_v42 = vmax.f32 %v359_v38, 0.0 }
 0x109   : > { %v370_v44 = vmax.f32 %v361_v40, 0.0 }
 0x10a   : > { %v374_v45 = vpack.c.bf16 %v369_v42, %v367_v41 }
 0x10b   : > { %v375_v46 = vpack.c.bf16 %v370_v44, %v368_v43 }
 0x10d   : > { %382 = vmatprep.subr.bf16.mxu1 %v375_v46 }
 0x10e   : > { %383 = vmatpush1.bf16.msra.mxu1 %v374_v45 }
 0x111   : > { %534 = vmatmul.mubr.msk.bf16.vlgmr.msra.gmra.mrb[0].mxu1 %vm376_vm2, %v371_v47 }
 0x1e4   : > { %v414_v48 = vpop.f32.mrb[0].mxu1 }
 0x1e5   : > { %421 = vst [vmem:[%s215_s8] sm:$0xff] %v414_v48  ;;  %v416_v49 = vpop.f32.mrb[1].mxu1 }
 0x1e6   : > { %422 = vst [vmem:[%s215_s8 + $0x8] sm:$0xff] %v416_v49  ;;  %v418_v50 = vpop.f32.mrb[2].mxu1 }
 0x1e7   : > { %v419_v51 = vpop.f32.mrb[3].mxu1 }
 0x1e8   : > { %623 = shalt.err (!%p620_p5)
}
 0x1e9   : > { %s624_s26 = scalar_lea.hbm %s805_s13, 256  ;;  %s628_s5 = scalar_lea.hbm %s854_s4, 512 }
 0x1ea   : > { %p625_p6 = scmp.ne.s32.totalorder %s805_s13, %s624_s26  ;;  %p629_p10 = scmp.lt.u32.totalorder %s805_s13, %s854_s4 }
 0x1eb   : > { %p630_p11 = scmp.lt.u32.totalorder %s628_s5, %s624_s26  ;;  %p632_p13 = scmp.lt.u32.totalorder %s624_s26, %s805_s13 }
 0x1ec   : > { %p626_p7 = pnand %p625_p6, %p757_p4 }
 0x1ed   : > { %p631_p12 = por %p630_p11, %p629_p10 }
 0x1ee   : > { %p627_p9 = pneg %p626_p7 }
 0x1ef   : > { %p633_p0 = por %p632_p13, %p631_p12 }
 0x1f1   : > { %p634_p1 = pnand %p633_p0, %p627_p9 }
 0x1f3   : > { %637 = shalt.err (!%p634_p1)
}
 0x1f4   : > { %542 = dma.vmem_to_hbm [thread:$0]  (%p757_p4), %s800_s9, 256, %s805_s13, %s424_s14  }
 0x1f5 PF: > { %p548_p2 = scmp.ge.s32.totalorder %s688_s20, 2  ;;  %s452_s8 = sand.u32 1, %s668_s15  }
 0x1f6   : > { %s453_s10 = scalar_lea.sflag [#allocation3], %s452_s8 }
 0x1f7   : > { %p545_p3 = pnand %p548_p2, %p764_p8 }
 0x1f9   : > { %663 = dma.done.wait (!%p545_p3), %s453_s10, 256  }
 0x1fa   : > { %665 = vsyncadd (!%p545_p3), %s453_s10, 4294967040  ;;  %s17_s20 = sadd.s32 1, %s688_s20   ;;  %s857_s15 = smov %s672_s16 }
 0x1fb   : > { %p14_p5 = scmp.ge.s32.totalorder %s17_s20, 4   ;;  %s858_s16 = smov %s676_s17 }
 0x1fc   : > { %s859_s17 = smov %s770_s28  ;;  %s860_s18 = smov %s684_s19 }
 0x1fd   : > { %s861_s19 = smov %s863_s23  ;;  %16 = sbr.rel (!%p14_p5) target bundleno = 4 (0x4), region = 71 }
 0x204   :  { %458 = vsyncpa [#allocation3], 1 }
 0x205   :  { %460 = vsyncpa [#allocation3 + $0x1], 1 }

</bundles_post_ra>
